<compile_context>
chip_gen: v7x
topology: tpu7x:2x2x1
jax: 0.10.0
libtpu: 0.0.40
codegen_flags: <defaults>
</compile_context>

<pallas_src>
import functools

import jax
import jax.numpy as jnp
from jax.experimental import pallas as pl
from jax.experimental.pallas import tpu as pltpu

_MIB = 1024 * 1024


def _round_up(x, m):
    return ((x + m - 1) // m) * m


def _cosine_mse_tile_kernel(a_ref, b_ref, lab_ref, out_ref, *, n_rows, block_rows):
    """One row tile: partial sum over rows of (cos_sim(a_i, b_i) - label_i)^2."""
    i = pl.program_id(0)
    last = pl.num_programs(0) - 1

    a = a_ref[...].astype(jnp.float32)              # [TN, D]
    b = b_ref[...].astype(jnp.float32)              # [TN, D]

    # Row-wise <a,b>, |a|^2, |b|^2 (VPU multiplies + XLU lane reductions).
    dot = jnp.sum(a * b, axis=1, keepdims=True)     # [TN, 1]
    sa2 = jnp.sum(a * a, axis=1, keepdims=True)     # [TN, 1]
    sb2 = jnp.sum(b * b, axis=1, keepdims=True)     # [TN, 1]

    # cos = dot / (|a| * |b|) == dot * rsqrt(|a|^2 * |b|^2) -> single EUP rsqrt.
    # The tiny clamp only guards exact-zero rows (otherwise 0/0 like the ref).
    denom2 = jnp.maximum(sa2 * sb2, 1e-30)
    scores = dot * jax.lax.rsqrt(denom2)            # [TN, 1]

    diff = scores - lab_ref[...].astype(jnp.float32)
    sq = diff * diff                                # [TN, 1]

    def write(partial):
        # Scatter the scalar partial sum into element [0, 0] of a fully aligned
        # (8, 128) block; everything else is zero so the outside jnp.sum is exact.
        r = jax.lax.broadcasted_iota(jnp.int32, (8, 128), 0)
        c = jax.lax.broadcasted_iota(jnp.int32, (8, 128), 1)
        out_ref[...] = jnp.where((r == 0) & (c == 0), partial, 0.0)

    @pl.when(i != last)
    def _():
        # Full tile: unmasked reduce (no iota / compare / where cost).
        write(jnp.sum(sq))

    @pl.when(i == last)
    def _():
        # Ragged tail: mask rows >= n_rows (they read undefined data).
        row = jax.lax.broadcasted_iota(jnp.int32, sq.shape, 0) + i * block_rows
        write(jnp.sum(jnp.where(row < n_rows, sq, 0.0)))


def contrastive_loss_cosine_similarity(issues_1_geb, issues_2_geb, labels,
                                       *, block_rows=None):
    """Scalar f32: MSE( row-wise cosine_similarity(A, B), labels ).

    A / B may be bf16 (recommended) or f32; the kernel accumulates in f32.
    """
    n, d = issues_1_geb.shape
    assert issues_2_geb.shape == (n, d)
    itemsize = max(jnp.dtype(issues_1_geb.dtype).itemsize,
                   jnp.dtype(issues_2_geb.dtype).itemsize)
    labels_col = jnp.asarray(labels, dtype=jnp.float32).reshape(n, 1)

    # ---- generation-aware VMEM budget (padded footprints) -------------------
    try:
        vmem_cap = int(pltpu.get_tpu_info().vmem_capacity_bytes)
    except Exception:  # pragma: no cover - conservative fallback (v7x-sized)
        vmem_cap = 64 * _MIB
    vmem_limit = int(min(vmem_cap * 3 // 4, 96 * _MIB))   # 48 MiB v7x / 96 MiB v5e,v6e
    live_budget = vmem_limit // 2                          # headroom for compiler scratch
    per_input_cap = 8 * _MIB if vmem_cap >= 128 * _MIB else 4 * _MIB

    d_pad = _round_up(d, 128)                              # lane-padded row width in VMEM
    if block_rows is None:
        # Live VMEM per row of block:
        #   2 inputs * 2 buffers * d_pad * itemsize   (lane-padded input tiles)
        # + 2 buffers * 128 lanes * 4 B               (labels column pads to 128 lanes)
        per_row_live = 4 * d_pad * itemsize + 2 * 128 * 4
        out_live = 2 * 8 * 128 * 4                         # (8,128) partial-sum slab x2
        rows_budget = max((live_budget - out_live) // per_row_live, 8)
        rows_cap = max(per_input_cap // (d_pad * itemsize), 8)
        block_rows = min(rows_budget, rows_cap)
    block_rows = int(min(block_rows, _round_up(n, 8)))
    block_rows = max((block_rows // 8) * 8, 8)

    grid = pl.cdiv(n, block_rows)

    kernel = functools.partial(_cosine_mse_tile_kernel,
                               n_rows=n, block_rows=block_rows)

    bytes_accessed = 2 * n * d * itemsize + n * 4 + grid * 8 * 128 * 4
    cost = pl.CostEstimate(flops=6 * n * d, transcendentals=n,
                           bytes_accessed=int(bytes_accessed))

    partials = pl.pallas_call(
        kernel,
        out_shape=jax.ShapeDtypeStruct((grid * 8, 128), jnp.float32),
        grid_spec=pltpu.PrefetchScalarGridSpec(
            num_scalar_prefetch=0,
            grid=(grid,),
            in_specs=[
                pl.BlockSpec((block_rows, d), lambda i: (i, 0)),
                pl.BlockSpec((block_rows, d), lambda i: (i, 0)),
                pl.BlockSpec((block_rows, 1), lambda i: (i, 0)),
            ],
            # Fully (8,128)-aligned, disjoint per tile -> unmasked lane-dense store.
            out_specs=pl.BlockSpec((8, 128), lambda i: (i, 0)),
        ),
        compiler_params=pltpu.CompilerParams(
            # Each tile writes its own output slab -> safe to shard rows across
            # the two TensorCores on v7x.
            dimension_semantics=("parallel",),
            vmem_limit_bytes=vmem_limit,
        ),
        cost_estimate=cost,
    )(issues_1_geb, issues_2_geb, labels_col)

    # Final mean over the TRUE row count (padded rows / slab zeros contribute 0).
    return jnp.sum(partials) / jnp.float32(n)


def _reference(a, b, labels):
    # Plain-JAX mirror of the PyTorch module (matmul-diagonal formulation).
    a32 = a.astype(jnp.float32)
    b32 = b.astype(jnp.float32)
    dot = a32 @ b32.T
    na = jnp.linalg.norm(a32, axis=1, keepdims=True)
    nb = jnp.linalg.norm(b32, axis=1, keepdims=True)
    scores = jnp.diagonal(dot / (na * nb.T))
    return jnp.mean((scores - labels.astype(jnp.float32)) ** 2)


if __name__ == "__main__":
    key = jax.random.PRNGKey(0)
    k1, k2, k3 = jax.random.split(key, 3)
    N, D = 20, 32
    issues_1 = jax.random.normal(k1, (N, D), dtype=jnp.float32)
    issues_2 = jax.random.normal(k2, (N, D), dtype=jnp.float32)
    labels = jax.random.bernoulli(k3, 0.5, (N,)).astype(jnp.float32)

    ref = _reference(issues_1, issues_2, labels)

    # Tiled path: grid = 3 with a ragged last tile -> exercises the masked branch.
    loss_tiled = contrastive_loss_cosine_similarity(issues_1, issues_2, labels,
                                                    block_rows=8)
    # Auto-sized path (single block here).
    loss_auto = contrastive_loss_cosine_similarity(issues_1, issues_2, labels)
    # bf16-in-HBM path (recommended production contract; f32 accumulation inside).
    loss_bf16 = contrastive_loss_cosine_similarity(issues_1.astype(jnp.bfloat16),
                                                   issues_2.astype(jnp.bfloat16),
                                                   labels, block_rows=8)
    jax.block_until_ready((loss_tiled, loss_auto, loss_bf16))

    assert jnp.allclose(loss_tiled, ref, atol=1e-5, rtol=1e-5), (loss_tiled, ref)
    assert jnp.allclose(loss_auto, ref, atol=1e-5, rtol=1e-5), (loss_auto, ref)
    assert jnp.allclose(loss_bf16, ref, atol=5e-2, rtol=5e-2), (loss_bf16, ref)

    print("KERNEL_OK")
</pallas_src>

<mosaic_0001>
module attributes {stable_mosaic.version = 11 : i64} {
  func.func @_cosine_mse_tile_kernel(%arg0: i32, %arg1: memref<8x32xf32, #tpu.memory_space<vmem>>, %arg2: memref<8x32xf32, #tpu.memory_space<vmem>>, %arg3: memref<8x1xf32, #tpu.memory_space<vmem>>, %arg4: memref<8x128xf32, #tpu.memory_space<vmem>>) attributes {dimension_semantics = [#tpu.dimension_semantics<parallel>], iteration_bounds = array<i64: 3>, scalar_prefetch = 0 : i64, scratch_operands = 0 : i64, tpu.core_type = #tpu.core_type<tc>, window_params = [{transform_indices = @transform_0, window_bounds = array<i64: 8, 32>}, {transform_indices = @transform_1, window_bounds = array<i64: 8, 32>}, {transform_indices = @transform_2, window_bounds = array<i64: 8, 1>}, {transform_indices = @transform_3, window_bounds = array<i64: 8, 128>}]} {
    %c0 = arith.constant 0 : index
    %c0_0 = arith.constant 0 : index
    %0 = vector.load %arg1[%c0, %c0_0] : memref<8x32xf32, #tpu.memory_space<vmem>>, vector<8x32xf32>
    %c0_1 = arith.constant 0 : index
    %c0_2 = arith.constant 0 : index
    %1 = vector.load %arg2[%c0_1, %c0_2] : memref<8x32xf32, #tpu.memory_space<vmem>>, vector<8x32xf32>
    %2 = arith.mulf %0, %1 : vector<8x32xf32>
    %cst = arith.constant dense<0.000000e+00> : vector<8xf32>
    %3 = vector.multi_reduction <add>, %2, %cst [1] : vector<8x32xf32> to vector<8xf32>
    %4 = vector.shape_cast %3 : vector<8xf32> to vector<8x1xf32>
    %5 = arith.mulf %0, %0 : vector<8x32xf32>
    %cst_3 = arith.constant dense<0.000000e+00> : vector<8xf32>
    %6 = vector.multi_reduction <add>, %5, %cst_3 [1] : vector<8x32xf32> to vector<8xf32>
    %7 = vector.shape_cast %6 : vector<8xf32> to vector<8x1xf32>
    %8 = arith.mulf %1, %1 : vector<8x32xf32>
    %cst_4 = arith.constant dense<0.000000e+00> : vector<8xf32>
    %9 = vector.multi_reduction <add>, %8, %cst_4 [1] : vector<8x32xf32> to vector<8xf32>
    %10 = vector.shape_cast %9 : vector<8xf32> to vector<8x1xf32>
    %11 = arith.mulf %7, %10 : vector<8x1xf32>
    %cst_5 = arith.constant 1.000000e-30 : f32
    %12 = vector.broadcast %cst_5 : f32 to vector<8x1xf32>
    %13 = arith.maximumf %11, %12 : vector<8x1xf32>
    %14 = math.rsqrt %13 : vector<8x1xf32>
    %15 = arith.mulf %4, %14 : vector<8x1xf32>
    %c0_6 = arith.constant 0 : index
    %c0_7 = arith.constant 0 : index
    %16 = vector.load %arg3[%c0_6, %c0_7] : memref<8x1xf32, #tpu.memory_space<vmem>>, vector<8x1xf32>
    %17 = arith.subf %15, %16 : vector<8x1xf32>
    %18 = arith.mulf %17, %17 : vector<8x1xf32>
    %c2_i32 = arith.constant 2 : i32
    %19 = arith.cmpi ne, %arg0, %c2_i32 : i32
    %20 = arith.extui %19 : i1 to i32
    %c0_i32 = arith.constant 0 : i32
    %21 = arith.cmpi ne, %20, %c0_i32 : i32
    scf.if %21 {
      %25 = vector.shape_cast %18 : vector<8x1xf32> to vector<1x8x1xf32>
      %cst_10 = arith.constant dense<0.000000e+00> : vector<1xf32>
      %26 = vector.multi_reduction <add>, %25, %cst_10 [1, 2] : vector<1x8x1xf32> to vector<1xf32>
      %27 = vector.shape_cast %26 : vector<1xf32> to vector<1x1x1xf32>
      %28 = vector.extract %27[0, 0, 0] : f32 from vector<1x1x1xf32>
      %29 = tpu.iota {dimensions = array<i32: 0>} : vector<8x128xi32>
      %30 = tpu.iota {dimensions = array<i32: 1>} : vector<8x128xi32>
      %c0_i32_11 = arith.constant 0 : i32
      %31 = vector.broadcast %c0_i32_11 : i32 to vector<8x128xi32>
      %32 = arith.cmpi eq, %29, %31 : vector<8x128xi32>
      %c0_i32_12 = arith.constant 0 : i32
      %33 = vector.broadcast %c0_i32_12 : i32 to vector<8x128xi32>
      %34 = arith.cmpi eq, %30, %33 : vector<8x128xi32>
      %35 = arith.andi %32, %34 : vector<8x128xi1>
      %cst_13 = arith.constant 0.000000e+00 : f32
      %36 = vector.broadcast %28 : f32 to vector<8x128xf32>
      %37 = vector.broadcast %cst_13 : f32 to vector<8x128xf32>
      %38 = arith.select %35, %36, %37 : vector<8x128xi1>, vector<8x128xf32>
      %c0_14 = arith.constant 0 : index
      %c0_15 = arith.constant 0 : index
      %39 = vector.load %arg4[%c0_14, %c0_15] : memref<8x128xf32, #tpu.memory_space<vmem>>, vector<8x128xf32>
      tpu.vector_store %arg4[%c0_14, %c0_15], %38 {strides = array<i32>} : memref<8x128xf32, #tpu.memory_space<vmem>>, vector<8x128xf32>,
    } else {
    }
    %c2_i32_8 = arith.constant 2 : i32
    %22 = arith.cmpi eq, %arg0, %c2_i32_8 : i32
    %23 = arith.extui %22 : i1 to i32
    %c0_i32_9 = arith.constant 0 : i32
    %24 = arith.cmpi ne, %23, %c0_i32_9 : i32
    scf.if %24 {
      %25 = tpu.iota {dimensions = array<i32: 0>} : vector<8x1xi32>
      %c8_i32 = arith.constant 8 : i32
      %26 = arith.muli %arg0, %c8_i32 : i32
      %27 = vector.broadcast %26 : i32 to vector<8x1xi32>
      %28 = arith.addi %25, %27 : vector<8x1xi32>
      %c20_i32 = arith.constant 20 : i32
      %29 = vector.broadcast %c20_i32 : i32 to vector<8x1xi32>
      %30 = arith.cmpi slt, %28, %29 : vector<8x1xi32>
      %cst_10 = arith.constant 0.000000e+00 : f32
      %31 = vector.broadcast %cst_10 : f32 to vector<8x1xf32>
      %32 = arith.select %30, %18, %31 : vector<8x1xi1>, vector<8x1xf32>
      %33 = vector.shape_cast %32 : vector<8x1xf32> to vector<1x8x1xf32>
      %cst_11 = arith.constant dense<0.000000e+00> : vector<1xf32>
      %34 = vector.multi_reduction <add>, %33, %cst_11 [1, 2] : vector<1x8x1xf32> to vector<1xf32>
      %35 = vector.shape_cast %34 : vector<1xf32> to vector<1x1x1xf32>
      %36 = vector.extract %35[0, 0, 0] : f32 from vector<1x1x1xf32>
      %37 = tpu.iota {dimensions = array<i32: 0>} : vector<8x128xi32>
      %38 = tpu.iota {dimensions = array<i32: 1>} : vector<8x128xi32>
      %c0_i32_12 = arith.constant 0 : i32
      %39 = vector.broadcast %c0_i32_12 : i32 to vector<8x128xi32>
      %40 = arith.cmpi eq, %37, %39 : vector<8x128xi32>
      %c0_i32_13 = arith.constant 0 : i32
      %41 = vector.broadcast %c0_i32_13 : i32 to vector<8x128xi32>
      %42 = arith.cmpi eq, %38, %41 : vector<8x128xi32>
      %43 = arith.andi %40, %42 : vector<8x128xi1>
      %cst_14 = arith.constant 0.000000e+00 : f32
      %44 = vector.broadcast %36 : f32 to vector<8x128xf32>
      %45 = vector.broadcast %cst_14 : f32 to vector<8x128xf32>
      %46 = arith.select %43, %44, %45 : vector<8x128xi1>, vector<8x128xf32>
      %c0_15 = arith.constant 0 : index
      %c0_16 = arith.constant 0 : index
      %47 = vector.load %arg4[%c0_15, %c0_16] : memref<8x128xf32, #tpu.memory_space<vmem>>, vector<8x128xf32>
      tpu.vector_store %arg4[%c0_15, %c0_16], %46 {strides = array<i32>} : memref<8x128xf32, #tpu.memory_space<vmem>>, vector<8x128xf32>,
    } else {
    }
    return
  }
  func.func @transform_0(%arg0: i32) -> (i32, i32) {
    %c0_i32 = arith.constant 0 : i32
    %c0_i32_0 = arith.constant 0 : i32
    return %arg0, %c0_i32 : i32, i32
  }
  func.func @transform_1(%arg0: i32) -> (i32, i32) {
    %c0_i32 = arith.constant 0 : i32
    %c0_i32_0 = arith.constant 0 : i32
    return %arg0, %c0_i32 : i32, i32
  }
  func.func @transform_2(%arg0: i32) -> (i32, i32) {
    %c0_i32 = arith.constant 0 : i32
    %c0_i32_0 = arith.constant 0 : i32
    return %arg0, %c0_i32 : i32, i32
  }
  func.func @transform_3(%arg0: i32) -> (i32, i32) {
    %c0_i32 = arith.constant 0 : i32
    %c0_i32_0 = arith.constant 0 : i32
    return %arg0, %c0_i32 : i32, i32
  }
}

</mosaic_0001>

<bundles_post_ra>
// kernel: tpu_custom_call.1
= control target key start
LH: loop header
LB: loop body
LE: loop exit
PB: predicated region body
PF: predicated region fallthrough
CT: control target
= control target key end

     0   :  { %8 = vsyncpa [#allocation3], 0  ;;  %s770_s0 = inlined_call_operand.vmem [shape: f32[20,32], index: 0, kind: input, shape index: {}]   ;;  %s771_s1 = inlined_call_operand.hbm [shape: f32[20,32], index: 1, kind: input, shape index: {}]   ;;  %s772_s2 = inlined_call_operand.vmem [shape: f32[20,1], index: 2, kind: input, shape index: {}]   ;;  %s773_s3 = inlined_call_operand.hbm [shape: f32[24,128], index: 3, kind: output, shape index: {}]  }
   0x1   :  { %10 = vsyncpa [#allocation3 + $0x1], 0 }
   0x2   :  { %11 = vsyncpa [#allocation4], 0 }
   0x3   :  { %13 = vsyncpa [#allocation4 + $0x1], 0  ;;  %s594_s12 = smov 0   ;;  %s596_s13 = smov 0  }
   0x4   :  { %s598_s14 = smov 0   ;;  %s600_s15 = smov 0  }
   0x5 LB: > { %s615_s16 = sadd.s32 4294967295, %s570_s15   ;;  %s405_s17 = sadd.s32 4294967294, %s570_s15   ;;  %s570_s15 = sphi %s600_s15, %s789_s15   ;;  %s566_s14 = sphi %s598_s14, %s788_s14   ;;  %s562_s13 = sphi %s596_s13, %s787_s13   ;;  %s558_s12 = sphi %s594_s12, %s786_s12  }
   0x6   : > { %s619_s18 = sadd.s32 1, %s570_s15   ;;  %s52_s19 = sadd.s32 1, %s566_s14 }
   0x7   : > { %s49_s20 = ssub.s32 %s570_s15, %s619_s18  ;;  %p59_p0 = scmp.ne.s32.totalorder %s566_s14, %s562_s13 }
   0x8   : > { %p50_p1 = scmp.eq.s32.totalorder %s49_s20, 0  ;;  %p60_p2 = scmp.eq.s32.totalorder %s570_s15, 0 }
   0x9   : > { %p65_p3 = scmp.ne.s32.totalorder %s562_s13, %s558_s12  ;;  %p66_p4 = scmp.eq.s32.totalorder %s615_s16, 0 }
   0xa   : > { %s631_s21 = scalar_select %p50_p1, %s566_s14, %s52_s19  }
   0xb   : > { %p633_p5 = por %p60_p2, %p59_p0  ;;  %p637_p6 = por %p66_p4, %p65_p3 }
   0xc   : > { %p774_p7 = scmp.eq.s32.totalorder %s615_s16, 2  ;;  %p121_p8 = scmp.eq.s32.totalorder %s405_s17, 2 }
   0xd   : > { %p438_p9 = scmp.lt.s32.totalorder %s570_s15, 3  ;;  %s148_s26 = sand.u32 1, %s566_s14  }
   0xe   : > { %p645_p10 = por %p774_p7, %p59_p0  ;;  %p649_p11 = por %p121_p8, %p65_p3 }
   0xf   : > { %s409_s27 = sshll.u32 %s570_s15, 7  ;;  %s408_s28 = sshll.u32 %s148_s26, 3 }
  0x10   : > { %s778_s24 = scalar_select %p645_p10, 1, 0 }
  0x11   : > { %s779_s25 = scalar_select %p649_p11, 1, 0 }
  0x12   : > { %s658_s4 = scalar_lea.hbm %s771_s1, %s409_s27  ;;  %s152_s5 = scalar_lea.vmem [#allocation2], %s408_s28 }
  0x13   : > { %s159_s6 = sshll.u32 %s152_s5, 4  ;;  %p662_p12 = pnand %p438_p9, %p633_p5  ;;  %s666_s6 = int_to_ptr.vmem [resolvable:$true] %s159_s6 }
  0x14   : > { %s149_s8 = scalar_lea.sflag [#allocation3], %s148_s26  ;;  %s474_s9 = scalar_lea.hbm %s658_s4, 128 }
  0x15   : > { %p475_p1 = scmp.ne.s32.totalorder %s658_s4, %s474_s9  ;;  %p476_p2 = pneg %p662_p12 }
  0x16   : > { %s479_s17 = scalar_lea.hbm %s771_s1, 384  ;;  %p480_p5 = scmp.lt.u32.totalorder %s658_s4, %s771_s1 }
  0x17   : > { %p477_p3 = pnand %p476_p2, %p475_p1  ;;  %p481_p8 = scmp.lt.u32.totalorder %s479_s17, %s474_s9 }
  0x18   : > { %p483_p7 = scmp.lt.u32.totalorder %s474_s9, %s658_s4 }
  0x19   : > { %p478_p4 = pneg %p477_p3  ;;  %p482_p9 = por %p481_p8, %p480_p5 }
  0x1b   : > { %p484_p13 = por %p483_p7, %p482_p9 }
  0x1d   : > { %p485_p0 = pnand %p484_p13, %p478_p4 }
  0x1f   : > { %488 = shalt.err (!%p485_p0)
}
  0x20   : > { %s489_s22 = scalar_lea.vmem %s666_s6, 128  ;;  %s572_s26 = smov [#allocation2]  }
  0x21   : > { %p490_p1 = scmp.ne.s32.totalorder %s666_s6, %s489_s22  ;;  %s494_s27 = sshll.u32 %s572_s26, 4  ;;  %s495_s27 = int_to_ptr.vmem [resolvable:$false] %s494_s27 }
  0x22   : > { %s496_s28 = scalar_lea.vmem %s495_s27, 256  ;;  %p497_p10 = scmp.lt.s32.totalorder %s666_s6, %s495_s27 }
  0x23   : > { %p492_p3 = pnand %p490_p1, %p476_p2  ;;  %p498_p5 = scmp.lt.s32.totalorder %s496_s28, %s489_s22 }
  0x25   : > { %p493_p11 = pneg %p492_p3  ;;  %p499_p8 = por %p498_p5, %p497_p10 }
  0x27   : > { %p500_p7 = pnand %p499_p8, %p493_p11 }
  0x29   : > { %503 = shalt.err (!%p500_p7)
}
  0x2a   : > { %433 = dma.hbm_to_vmem [thread:$0]  (!%p662_p12), %s658_s4, 128, %s666_s6, %s149_s8  }
  0x2b   : > { %p781_p13 = scmp.lt.s32.totalorder %s570_s15, 4  ;;  %p782_p0 = scmp.ge.s32.totalorder %s570_s15, 1 }
  0x2d   : > { %p172_p2 = pnand %p782_p0, %p781_p13 }
  0x2e   : > { %s700_s29 = sand.u32 (!%p172_p2), 1, %s562_s13  }
  0x2f   : > { %175 = sbr.rel (%p172_p2) target bundleno = 682 (0x2aa), region = 32  ;;  %s411_s30 = sshll.u32 (!%p172_p2), %s700_s29, 3 }
  0x30   : > { %s178_s5 = scalar_lea.sflag (!%p172_p2), [#allocation3], %s700_s29  ;;  %s181_s7 = scalar_lea.vmem (!%p172_p2), [#allocation2], %s411_s30 }
  0x36   : > { %549 = dma.done.wait (%p637_p6), %s178_s5, 128  }
  0x37   : > { %551 = vsyncadd (%p637_p6), %s178_s5, 4294967168  ;;  %p212_p10 = scmp.lt.s32.totalorder %s615_s16, 2  ;;  %vm223_vm0 = vcmask 261120   ;;  %v221_v1 = vld [vmem:[%s181_s7] sm:$0xff]  ;;  %s720_s19 = scalar_lea.vmem [#allocation5], %s411_s30 }
  0x38   : > { %v231_v3 = vmul.f32 %v221_v1, %v221_v1  ;;  %p783_p6 = scmp.eq.s32.totalorder %s615_s16, 2 }
  0x39   : > { %s213_s4 = scalar_select %p212_p10, %s615_s16, 2 }
  0x3a   : > { %v232_v7 = vsel %vm223_vm0, %v231_v3, 0.0  ;;  %vm246_vm1 = vcmask (!%p783_p6), 7168   ;;  %v257_v26 = vlaneseq (!%p783_p6) }
  0x3b   : > { %s413_s6 = sshll.u32 %s213_s4, 3 }
  0x3c   : > { %s215_s10 = scalar_lea.vmem %s770_s0, %s413_s6  ;;  %s219_s17 = scalar_lea.vmem %s772_s2, %s413_s6  ;;  %v258_v27 = vshrl.u32 (!%p783_p6), %v257_v26, 7  ;;  %v260_v28 = vand.u32 (!%p783_p6), 127, %v257_v26 }
  0x3d   : > { %v220_v0 = vld [vmem:[%s215_s10] sm:$0xff] }
  0x3e   : > { %v227_v2 = vmul.f32 %v220_v0, %v220_v0  ;;  %v222_v4 = vmul.f32 %v221_v1, %v220_v0  ;;  %v239_v14 = vld [vmem:[%s219_s17] sm:$0xff]  ;;  %vm261_vm2 = vcmp.eq.s32.totalorder (!%p783_p6), %v258_v27, 0  ;;  %vm262_vm3 = vcmp.eq.s32.totalorder (!%p783_p6), %v260_v28, 0 }
  0x3f   : > { %vm263_vm4 = vmand (!%p783_p6), %vm261_vm2, %vm262_vm3 }
  0x40   : > { %v228_v5 = vsel %vm223_vm0, %v227_v2, 0.0  ;;  %v224_v6 = vsel %vm223_vm0, %v222_v4, 0.0 }
  0x41   : > { %229 = vadd.xlane.f32.xlu0 %v228_v5  ;;  %225 = vadd.xlane.f32.xlu1 %v224_v6 }
  0x45   : > { %233 = vadd.xlane.f32.xlu0 %v232_v7 }
  0xce   : > { %v230_v8 = vpop.xlane.xlu0 %229  ;;  %v226_v12 = vpop.xlane.xlu1 %225 }
  0xd2   : > { %v234_v9 = vpop.xlane.xlu0 %233 }
  0xd3   : > { %v235_v10 = vmul.f32 %v234_v9, %v230_v8 }
  0xd5   : > { %v236_v11 = vmax.f32 %v235_v10, 1e-30 }
  0xd7   : > { %472 = vrsqrt.f32 %v236_v11 }
  0xe0   : > { %245 = sbr.rel (%p783_p6) target bundleno = 440 (0x1b8), region = 40 }
  0xe1   : > { %v473_v13 = vpop.eup %472 }
  0xe2   : > { %v238_v15 = vmul.f32 %v473_v13, %v226_v12 }
  0xe4   : > { %v240_v16 = vsub.f32 %v238_v15, %v239_v14 }
  0xe6   : > { %v241_v17 = vmul.f32 %v240_v16, %v240_v16 }
  0xe8   : > { %v247_v18 = vsel %vm246_vm1, %v241_v17, 0.0 }
  0xe9   : > { %248 = vadd.xlane.f32.xlu0 %v247_v18 }
 0x176   : > { %v249_v19 = vpop.xlane.xlu0 %248 }
 0x177   : > { %v250_v20 = vrot.slane %v249_v19, 4 }
 0x179   : > { %v251_v21 = vadd.f32 %v250_v20, %v249_v19 }
 0x17b   : > { %v252_v22 = vrot.slane %v251_v21, 2 }
 0x17d   : > { %v253_v23 = vadd.f32 %v252_v22, %v251_v21 }
 0x17f   : > { %v254_v24 = vrot.slane %v253_v23, 1 }
 0x181   : > { %v255_v25 = vadd.f32 %v254_v24, %v253_v23 }
 0x183   : > { %422 = vpush %v255_v25 }
 0x1b4   : > { %s423_s20 = spop %422 }
 0x1b5   : > { %v264_v29 = vstv %s423_s20 }
 0x1b6   : > { %v265_v30 = vsel %vm263_vm4, %v264_v29, 0.0 }
 0x1b7   : > { %266 = vst [vmem:[%s720_s19] sm:$0xff] %v265_v30 }
 0x1b8 PF: > { %p416_p11 = scmp.ne.s32.totalorder %s615_s16, 2 }
 0x1b9   : > { %v271_v31 = vlaneseq (!%p416_p11)  ;;  %s417_s22 = sshll.u32 (!%p416_p11), %s615_s16, 3  ;;  %vm278_vm5 = vcmask (!%p416_p11), 7168  }
 0x1ba   : > { %270 = sbr.rel (%p416_p11) target bundleno = 657 (0x291), region = 44  ;;  %v274_v32 = vstv (!%p416_p11), %s417_s22 }
 0x1bb   : > { %v272_v33 = vshrl.u32 (!%p416_p11), %v271_v31, 7  ;;  %v290_v44 = vand.u32 (!%p416_p11), 127, %v271_v31 }
 0x1bd   : > { %v275_v34 = vadd.s32 (!%p416_p11), %v274_v32, %v272_v33  ;;  %vm291_vm7 = vcmp.eq.s32.totalorder (!%p416_p11), %v272_v33, 0  ;;  %vm292_vm8 = vcmp.eq.s32.totalorder (!%p416_p11), %v290_v44, 0 }
 0x1be   : > { %vm293_vm9 = vmand (!%p416_p11), %vm291_vm7, %vm292_vm8 }
 0x1bf   : > { %vm276_vm6 = vcmp.lt.s32.totalorder (!%p416_p11), %v275_v34, 20 }
 0x1c0   : > { %v277_v35 = vsel (!%p416_p11), %vm276_vm6, %v241_v17, 0.0 }
 0x1c1   : > { %v279_v36 = vsel %vm278_vm5, %v277_v35, 0.0 }
 0x1c2   : > { %280 = vadd.xlane.f32.xlu0 %v279_v36 }
 0x24f   : > { %v281_v37 = vpop.xlane.xlu0 %280 }
 0x250   : > { %v282_v38 = vrot.slane %v281_v37, 4 }
 0x252   : > { %v283_v39 = vadd.f32 %v282_v38, %v281_v37 }
 0x254   : > { %v284_v40 = vrot.slane %v283_v39, 2 }
 0x256   : > { %v285_v41 = vadd.f32 %v284_v40, %v283_v39 }
 0x258   : > { %v286_v42 = vrot.slane %v285_v41, 1 }
 0x25a   : > { %v287_v43 = vadd.f32 %v286_v42, %v285_v41 }
 0x25c   : > { %424 = vpush %v287_v43 }
 0x28d   : > { %s425_s26 = spop %424 }
 0x28e   : > { %v294_v45 = vstv %s425_s26 }
 0x28f   : > { %v295_v46 = vsel %vm293_vm9, %v294_v45, 0.0 }
 0x290   : > { %296 = vst [vmem:[%s720_s19] sm:$0xff] %v295_v46 }
 0x291 PF: > { %s419_s27 = sshll.u32 %s615_s16, 7  ;;  %s311_s7 = sshll.u32 %s720_s19, 4  ;;  %s312_s7 = int_to_ptr.vmem [resolvable:$true] %s311_s7 }
 0x292   : > { %s732_s5 = scalar_lea.hbm %s773_s3, %s419_s27  ;;  %s298_s4 = scalar_lea.sflag [#allocation4], %s700_s29 }
 0x293   : > { %s504_s6 = scalar_lea.vmem %s312_s7, 128  ;;  %p784_p4 = scmp.ne.s32.totalorder %s778_s24, 0 }
 0x294   : > { %p505_p12 = scmp.ne.s32.totalorder %s312_s7, %s504_s6  ;;  %s573_s8 = smov [#allocation5]  }
 0x295   : > { %s508_s9 = sshll.u32 %s573_s8, 4  ;;  %s509_s9 = int_to_ptr.vmem [resolvable:$false] %s508_s9 }
 0x296   : > { %p506_p9 = pnand %p505_p12, %p784_p4  ;;  %s510_s10 = scalar_lea.vmem %s509_s9, 256 }
 0x297   : > { %p511_p3 = scmp.lt.s32.totalorder %s312_s7, %s509_s9  ;;  %p512_p5 = scmp.lt.s32.totalorder %s510_s10, %s504_s6 }
 0x298   : > { %p507_p1 = pneg %p506_p9 }
 0x299   : > { %p513_p8 = por %p512_p5, %p511_p3 }
 0x29b   : > { %p514_p7 = pnand %p513_p8, %p507_p1 }
 0x29d   : > { %517 = shalt.err (!%p514_p7)
}
 0x29e   : > { %s518_s16 = scalar_lea.hbm %s732_s5, 128  ;;  %s522_s11 = scalar_lea.hbm %s773_s3, 384 }
 0x29f   : > { %p519_p13 = scmp.ne.s32.totalorder %s732_s5, %s518_s16  ;;  %p523_p10 = scmp.lt.u32.totalorder %s732_s5, %s773_s3 }
 0x2a0   : > { %p524_p6 = scmp.lt.u32.totalorder %s522_s11, %s518_s16  ;;  %p526_p12 = scmp.lt.u32.totalorder %s518_s16, %s732_s5 }
 0x2a1   : > { %p520_p0 = pnand %p519_p13, %p784_p4 }
 0x2a2   : > { %p525_p11 = por %p524_p6, %p523_p10 }
 0x2a3   : > { %p521_p2 = pneg %p520_p0 }
 0x2a4   : > { %p527_p9 = por %p526_p12, %p525_p11 }
 0x2a6   : > { %p528_p1 = pnand %p527_p9, %p521_p2 }
 0x2a8   : > { %531 = shalt.err (!%p528_p1)
}
 0x2a9   : > { %428 = dma.vmem_to_hbm [thread:$0]  (%p784_p4), %s312_s7, 128, %s732_s5, %s298_s4  }
 0x2aa PF: > { %p439_p3 = scmp.ge.s32.totalorder %s570_s15, 2  ;;  %s323_s20 = sand.u32 1, %s558_s12  }
 0x2ab   : > { %p785_p5 = scmp.ne.s32.totalorder %s779_s25, 0  ;;  %s324_s22 = scalar_lea.sflag [#allocation4], %s323_s20 }
 0x2ad   : > { %p435_p8 = pnand %p439_p3, %p785_p5 }
 0x2af   : > { %553 = dma.done.wait (!%p435_p8), %s324_s22, 128  }
 0x2b0   : > { %555 = vsyncadd (!%p435_p8), %s324_s22, 4294967168  ;;  %p16_p7 = scmp.ge.s32.totalorder %s619_s18, 5   ;;  %s786_s12 = smov %s562_s13 }
 0x2b1   : > { %s787_s13 = smov %s566_s14  ;;  %s788_s14 = smov %s631_s21 }
 0x2b2   : > { %s789_s15 = smov %s619_s18  ;;  %18 = sbr.rel (!%p16_p7) target bundleno = 5 (0x5), region = 91 }
 0x2b9   :  { %329 = vsyncpa [#allocation3], 1 }
 0x2ba   :  { %331 = vsyncpa [#allocation3 + $0x1], 1 }
 0x2bb   :  { %332 = vsyncpa [#allocation4], 1 }
 0x2bc   :  { %334 = vsyncpa [#allocation4 + $0x1], 1 }

</bundles_post_ra>
